<compile_context>
chip_gen: v5e
topology: v5e:2x2
jax: 0.10.0
libtpu: 0.0.40
codegen_flags: <defaults>
</compile_context>

<pallas_src>
import functools

import numpy as np
import jax
import jax.numpy as jnp
from jax.experimental import pallas as pl
from jax.experimental.pallas import tpu as pltpu


def conv3x3_kernel(x_ref, w_ref, m_ref, o_ref, *, width):
    """One image per grid step.

    x_ref: (Cin, H*W)      image, channels on sublanes, flat spatial on lanes
    w_ref: (9, Cout, Cin)  per-tap weight matrices, tap index t = ky*3 + kx
    m_ref: (2, H*W)        column masks: [0] zero where x==0   (for dx=+1 taps)
                                          [1] zero where x==W-1 (for dx=-1 taps)
    o_ref: (Cout, H*W)
    """
    cin, hw = x_ref.shape
    x = x_ref[...]
    masks = m_ref[...]

    # Pre-zero the source columns a horizontally shifted tap must never read
    # (this implements padding=1 in x).  Padding=1 in y is handled for free by
    # the zero fill at the two ends of the flattened spatial axis below.
    x_by_dx = {
        -1: x * masks[1:2, :],   # dx = -1 never validly reads column W-1
        0: x,
        1: x * masks[0:1, :],    # dx = +1 never validly reads column 0
    }

    acc = None
    for dy in (-1, 0, 1):
        for dx in (-1, 0, 1):
            shift = dy * width + dx          # flat-index source offset
            src = x_by_dx[dx]
            if shift > 0:
                shifted = jnp.concatenate(
                    [src[:, shift:], jnp.zeros((cin, shift), src.dtype)], axis=1)
            elif shift < 0:
                shifted = jnp.concatenate(
                    [jnp.zeros((cin, -shift), src.dtype), src[:, :shift]], axis=1)
            else:
                shifted = src
            tap = (dy + 1) * 3 + (dx + 1)
            w_t = w_ref[tap]                 # (Cout, Cin)
            part = jnp.dot(w_t, shifted, preferred_element_type=jnp.float32)
            acc = part if acc is None else acc + part

    # TODO(synk): fuse jax.nn.gelu(acc) here for the gelu=True module variant.
    o_ref[...] = acc.astype(o_ref.dtype)


def conv3x3_pallas(x_nchw, weight_oihw):
    """Forward of conv3x3: Conv2d(k=3, s=1, p=1, bias=False); NCHW in / NCHW out."""
    n, cin, h, w = x_nchw.shape
    cout = weight_oihw.shape[0]
    assert weight_oihw.shape == (cout, cin, 3, 3)
    hw = h * w

    # Free (metadata-only) reshape keeps the kernel I/O lane-dense:
    # spatial on lanes, channels on sublanes.  No transposes, no HBM passes.
    x_flat = x_nchw.reshape(n, cin, hw)

    # (Cout, Cin, 3, 3) -> (9, Cout, Cin): one (Cout, Cin) matrix per tap,
    # tap-major (ky, kx).  Tiny tensor; negligible cost.
    w_taps = jnp.transpose(weight_oihw, (2, 3, 0, 1)).reshape(9, cout, cin)

    # 0/1 column masks for the horizontally shifted taps (padding=1 in x),
    # built host-side once (shape-only constants).
    col = np.arange(hw, dtype=np.int64) % w
    edge_masks = jnp.asarray(
        np.stack([col != 0, col != (w - 1)]).astype(np.float32),
        dtype=x_nchw.dtype)                                    # (2, H*W)

    kernel = functools.partial(conv3x3_kernel, width=w)

    out_flat = pl.pallas_call(
        kernel,
        out_shape=jax.ShapeDtypeStruct((n, cout, hw), x_nchw.dtype),
        grid=(n,),   # one image per step; "parallel" pipelines DMA vs compute
        in_specs=[   # and lets v7x shard the batch across both TensorCores
            pl.BlockSpec((None, cin, hw), lambda i: (i, 0, 0)),
            pl.BlockSpec((9, cout, cin), lambda i: (0, 0, 0)),
            pl.BlockSpec((2, hw), lambda i: (0, 0)),
        ],
        out_specs=pl.BlockSpec((None, cout, hw), lambda i: (i, 0, 0)),
        compiler_params=pltpu.CompilerParams(
            dimension_semantics=("parallel",)),
    )(x_flat, w_taps, edge_masks)

    # TODO(synk): for very large H*W add an H-tile grid axis (halo rows via a
    # manual DMA) so per-step VMEM stays small on v7x, and optionally cast the
    # MXU operands to bf16 (f32 accumulation) once the model tolerates it.
    return out_flat.reshape(n, cout, h, w)


if __name__ == "__main__":
    key = jax.random.PRNGKey(0)
    kx, kw = jax.random.split(key)

    # Small shapes consistent with the module: N=2, Cin=4, H=W=16, Cout=8
    N, Cin, H, W, Cout = 2, 4, 16, 16, 8
    x = jax.random.normal(kx, (N, Cin, H, W), dtype=jnp.float32)
    weight = 0.1 * jax.random.normal(kw, (Cout, Cin, 3, 3), dtype=jnp.float32)

    out = jax.jit(conv3x3_pallas)(x, weight)
    out = jax.block_until_ready(out)
    assert out.shape == (N, Cout, H, W)

    # Sanity check against XLA's conv (same semantics as nn.Conv2d, bias=False)
    ref = jax.lax.conv_general_dilated(
        x, weight, window_strides=(1, 1), padding="SAME",
        dimension_numbers=("NCHW", "OIHW", "NCHW"))
    max_err = float(jnp.max(jnp.abs(out - ref)))
    assert jnp.allclose(out, ref, atol=2e-4, rtol=2e-4), max_err

    print("KERNEL_OK")
</pallas_src>

<mosaic_0001>
module attributes {stable_mosaic.version = 11 : i64} {
  func.func @conv3x3_kernel(%arg0: i32, %arg1: memref<1x4x256xf32, #tpu.memory_space<vmem>>, %arg2: memref<9x8x4xf32, #tpu.memory_space<vmem>>, %arg3: memref<2x256xf32, #tpu.memory_space<vmem>>, %arg4: memref<1x8x256xf32, #tpu.memory_space<vmem>>) attributes {dimension_semantics = [#tpu.dimension_semantics<parallel>], iteration_bounds = array<i64: 2>, scalar_prefetch = 0 : i64, scratch_operands = 0 : i64, tpu.core_type = #tpu.core_type<tc>, window_params = [{transform_indices = @transform_0, window_bounds = array<i64: 1, 4, 256>}, {pipeline_mode = #tpu.pipeline_mode<synchronous>, transform_indices = @transform_1, window_bounds = array<i64: 9, 8, 4>}, {pipeline_mode = #tpu.pipeline_mode<synchronous>, transform_indices = @transform_2, window_bounds = array<i64: 2, 256>}, {transform_indices = @transform_3, window_bounds = array<i64: 1, 8, 256>}]} {
    %c0 = arith.constant 0 : index
    %c0_0 = arith.constant 0 : index
    %c0_1 = arith.constant 0 : index
    %0 = vector.load %arg1[%c0, %c0_0, %c0_1] : memref<1x4x256xf32, #tpu.memory_space<vmem>>, vector<1x4x256xf32>
    %1 = vector.shape_cast %0 : vector<1x4x256xf32> to vector<4x256xf32>
    %c0_2 = arith.constant 0 : index
    %c0_3 = arith.constant 0 : index
    %2 = vector.load %arg3[%c0_2, %c0_3] : memref<2x256xf32, #tpu.memory_space<vmem>>, vector<2x256xf32>
    %3 = vector.extract_strided_slice %2 {offsets = [1, 0], sizes = [1, 256], strides = [1, 1]} : vector<2x256xf32> to vector<1x256xf32>
    %4 = vector.broadcast %3 : vector<1x256xf32> to vector<4x256xf32>
    %5 = arith.mulf %1, %4 : vector<4x256xf32>
    %6 = vector.extract_strided_slice %2 {offsets = [0, 0], sizes = [1, 256], strides = [1, 1]} : vector<2x256xf32> to vector<1x256xf32>
    %7 = vector.broadcast %6 : vector<1x256xf32> to vector<4x256xf32>
    %8 = arith.mulf %1, %7 : vector<4x256xf32>
    %cst = arith.constant 0.000000e+00 : f32
    %9 = vector.broadcast %cst : f32 to vector<4x17xf32>
    %10 = vector.extract_strided_slice %5 {offsets = [0, 0], sizes = [4, 239], strides = [1, 1]} : vector<4x256xf32> to vector<4x239xf32>
    %11 = tpu.concatenate %9, %10 in 1 : vector<4x17xf32>, vector<4x239xf32> -> vector<4x256xf32>
    %c0_4 = arith.constant 0 : index
    %c0_5 = arith.constant 0 : index
    %c0_6 = arith.constant 0 : index
    %12 = vector.load %arg2[%c0_4, %c0_5, %c0_6] : memref<9x8x4xf32, #tpu.memory_space<vmem>>, vector<1x8x4xf32>
    %13 = vector.shape_cast %12 : vector<1x8x4xf32> to vector<8x4xf32>
    %cst_7 = arith.constant dense<0.000000e+00> : vector<8x256xf32>
    %14 = tpu.matmul %13, %11, %cst_7 {dimension_numbers = #tpu.dot_dimension_numbers<[1], [0], [0], [1], [0, 0, 1, 1], [], []>} : vector<8x4xf32>, vector<4x256xf32>, vector<8x256xf32> -> vector<8x256xf32>
    %cst_8 = arith.constant 0.000000e+00 : f32
    %15 = vector.broadcast %cst_8 : f32 to vector<4x16xf32>
    %16 = vector.extract_strided_slice %1 {offsets = [0, 0], sizes = [4, 240], strides = [1, 1]} : vector<4x256xf32> to vector<4x240xf32>
    %17 = tpu.concatenate %15, %16 in 1 : vector<4x16xf32>, vector<4x240xf32> -> vector<4x256xf32>
    %c1 = arith.constant 1 : index
    %c0_9 = arith.constant 0 : index
    %c0_10 = arith.constant 0 : index
    %18 = vector.load %arg2[%c1, %c0_9, %c0_10] : memref<9x8x4xf32, #tpu.memory_space<vmem>>, vector<1x8x4xf32>
    %19 = vector.shape_cast %18 : vector<1x8x4xf32> to vector<8x4xf32>
    %cst_11 = arith.constant dense<0.000000e+00> : vector<8x256xf32>
    %20 = tpu.matmul %19, %17, %cst_11 {dimension_numbers = #tpu.dot_dimension_numbers<[1], [0], [0], [1], [0, 0, 1, 1], [], []>} : vector<8x4xf32>, vector<4x256xf32>, vector<8x256xf32> -> vector<8x256xf32>
    %21 = arith.addf %14, %20 : vector<8x256xf32>
    %cst_12 = arith.constant 0.000000e+00 : f32
    %22 = vector.broadcast %cst_12 : f32 to vector<4x15xf32>
    %23 = vector.extract_strided_slice %8 {offsets = [0, 0], sizes = [4, 241], strides = [1, 1]} : vector<4x256xf32> to vector<4x241xf32>
    %24 = tpu.concatenate %22, %23 in 1 : vector<4x15xf32>, vector<4x241xf32> -> vector<4x256xf32>
    %c2 = arith.constant 2 : index
    %c0_13 = arith.constant 0 : index
    %c0_14 = arith.constant 0 : index
    %25 = vector.load %arg2[%c2, %c0_13, %c0_14] : memref<9x8x4xf32, #tpu.memory_space<vmem>>, vector<1x8x4xf32>
    %26 = vector.shape_cast %25 : vector<1x8x4xf32> to vector<8x4xf32>
    %cst_15 = arith.constant dense<0.000000e+00> : vector<8x256xf32>
    %27 = tpu.matmul %26, %24, %cst_15 {dimension_numbers = #tpu.dot_dimension_numbers<[1], [0], [0], [1], [0, 0, 1, 1], [], []>} : vector<8x4xf32>, vector<4x256xf32>, vector<8x256xf32> -> vector<8x256xf32>
    %28 = arith.addf %21, %27 : vector<8x256xf32>
    %cst_16 = arith.constant 0.000000e+00 : f32
    %29 = vector.broadcast %cst_16 : f32 to vector<4x1xf32>
    %30 = vector.extract_strided_slice %5 {offsets = [0, 0], sizes = [4, 255], strides = [1, 1]} : vector<4x256xf32> to vector<4x255xf32>
    %31 = tpu.concatenate %29, %30 in 1 : vector<4x1xf32>, vector<4x255xf32> -> vector<4x256xf32>
    %c3 = arith.constant 3 : index
    %c0_17 = arith.constant 0 : index
    %c0_18 = arith.constant 0 : index
    %32 = vector.load %arg2[%c3, %c0_17, %c0_18] : memref<9x8x4xf32, #tpu.memory_space<vmem>>, vector<1x8x4xf32>
    %33 = vector.shape_cast %32 : vector<1x8x4xf32> to vector<8x4xf32>
    %cst_19 = arith.constant dense<0.000000e+00> : vector<8x256xf32>
    %34 = tpu.matmul %33, %31, %cst_19 {dimension_numbers = #tpu.dot_dimension_numbers<[1], [0], [0], [1], [0, 0, 1, 1], [], []>} : vector<8x4xf32>, vector<4x256xf32>, vector<8x256xf32> -> vector<8x256xf32>
    %35 = arith.addf %28, %34 : vector<8x256xf32>
    %c4 = arith.constant 4 : index
    %c0_20 = arith.constant 0 : index
    %c0_21 = arith.constant 0 : index
    %36 = vector.load %arg2[%c4, %c0_20, %c0_21] : memref<9x8x4xf32, #tpu.memory_space<vmem>>, vector<1x8x4xf32>
    %37 = vector.shape_cast %36 : vector<1x8x4xf32> to vector<8x4xf32>
    %cst_22 = arith.constant dense<0.000000e+00> : vector<8x256xf32>
    %38 = tpu.matmul %37, %1, %cst_22 {dimension_numbers = #tpu.dot_dimension_numbers<[1], [0], [0], [1], [0, 0, 1, 1], [], []>} : vector<8x4xf32>, vector<4x256xf32>, vector<8x256xf32> -> vector<8x256xf32>
    %39 = arith.addf %35, %38 : vector<8x256xf32>
    %40 = vector.extract_strided_slice %8 {offsets = [0, 1], sizes = [4, 255], strides = [1, 1]} : vector<4x256xf32> to vector<4x255xf32>
    %cst_23 = arith.constant 0.000000e+00 : f32
    %41 = vector.broadcast %cst_23 : f32 to vector<4x1xf32>
    %42 = tpu.concatenate %40, %41 in 1 : vector<4x255xf32>, vector<4x1xf32> -> vector<4x256xf32>
    %c5 = arith.constant 5 : index
    %c0_24 = arith.constant 0 : index
    %c0_25 = arith.constant 0 : index
    %43 = vector.load %arg2[%c5, %c0_24, %c0_25] : memref<9x8x4xf32, #tpu.memory_space<vmem>>, vector<1x8x4xf32>
    %44 = vector.shape_cast %43 : vector<1x8x4xf32> to vector<8x4xf32>
    %cst_26 = arith.constant dense<0.000000e+00> : vector<8x256xf32>
    %45 = tpu.matmul %44, %42, %cst_26 {dimension_numbers = #tpu.dot_dimension_numbers<[1], [0], [0], [1], [0, 0, 1, 1], [], []>} : vector<8x4xf32>, vector<4x256xf32>, vector<8x256xf32> -> vector<8x256xf32>
    %46 = arith.addf %39, %45 : vector<8x256xf32>
    %47 = vector.extract_strided_slice %5 {offsets = [0, 15], sizes = [4, 241], strides = [1, 1]} : vector<4x256xf32> to vector<4x241xf32>
    %cst_27 = arith.constant 0.000000e+00 : f32
    %48 = vector.broadcast %cst_27 : f32 to vector<4x15xf32>
    %49 = tpu.concatenate %47, %48 in 1 : vector<4x241xf32>, vector<4x15xf32> -> vector<4x256xf32>
    %c6 = arith.constant 6 : index
    %c0_28 = arith.constant 0 : index
    %c0_29 = arith.constant 0 : index
    %50 = vector.load %arg2[%c6, %c0_28, %c0_29] : memref<9x8x4xf32, #tpu.memory_space<vmem>>, vector<1x8x4xf32>
    %51 = vector.shape_cast %50 : vector<1x8x4xf32> to vector<8x4xf32>
    %cst_30 = arith.constant dense<0.000000e+00> : vector<8x256xf32>
    %52 = tpu.matmul %51, %49, %cst_30 {dimension_numbers = #tpu.dot_dimension_numbers<[1], [0], [0], [1], [0, 0, 1, 1], [], []>} : vector<8x4xf32>, vector<4x256xf32>, vector<8x256xf32> -> vector<8x256xf32>
    %53 = arith.addf %46, %52 : vector<8x256xf32>
    %54 = vector.extract_strided_slice %1 {offsets = [0, 16], sizes = [4, 240], strides = [1, 1]} : vector<4x256xf32> to vector<4x240xf32>
    %cst_31 = arith.constant 0.000000e+00 : f32
    %55 = vector.broadcast %cst_31 : f32 to vector<4x16xf32>
    %56 = tpu.concatenate %54, %55 in 1 : vector<4x240xf32>, vector<4x16xf32> -> vector<4x256xf32>
    %c7 = arith.constant 7 : index
    %c0_32 = arith.constant 0 : index
    %c0_33 = arith.constant 0 : index
    %57 = vector.load %arg2[%c7, %c0_32, %c0_33] : memref<9x8x4xf32, #tpu.memory_space<vmem>>, vector<1x8x4xf32>
    %58 = vector.shape_cast %57 : vector<1x8x4xf32> to vector<8x4xf32>
    %cst_34 = arith.constant dense<0.000000e+00> : vector<8x256xf32>
    %59 = tpu.matmul %58, %56, %cst_34 {dimension_numbers = #tpu.dot_dimension_numbers<[1], [0], [0], [1], [0, 0, 1, 1], [], []>} : vector<8x4xf32>, vector<4x256xf32>, vector<8x256xf32> -> vector<8x256xf32>
    %60 = arith.addf %53, %59 : vector<8x256xf32>
    %61 = vector.extract_strided_slice %8 {offsets = [0, 17], sizes = [4, 239], strides = [1, 1]} : vector<4x256xf32> to vector<4x239xf32>
    %cst_35 = arith.constant 0.000000e+00 : f32
    %62 = vector.broadcast %cst_35 : f32 to vector<4x17xf32>
    %63 = tpu.concatenate %61, %62 in 1 : vector<4x239xf32>, vector<4x17xf32> -> vector<4x256xf32>
    %c8 = arith.constant 8 : index
    %c0_36 = arith.constant 0 : index
    %c0_37 = arith.constant 0 : index
    %64 = vector.load %arg2[%c8, %c0_36, %c0_37] : memref<9x8x4xf32, #tpu.memory_space<vmem>>, vector<1x8x4xf32>
    %65 = vector.shape_cast %64 : vector<1x8x4xf32> to vector<8x4xf32>
    %cst_38 = arith.constant dense<0.000000e+00> : vector<8x256xf32>
    %66 = tpu.matmul %65, %63, %cst_38 {dimension_numbers = #tpu.dot_dimension_numbers<[1], [0], [0], [1], [0, 0, 1, 1], [], []>} : vector<8x4xf32>, vector<4x256xf32>, vector<8x256xf32> -> vector<8x256xf32>
    %67 = arith.addf %60, %66 : vector<8x256xf32>
    %c0_39 = arith.constant 0 : index
    %c0_40 = arith.constant 0 : index
    %c0_41 = arith.constant 0 : index
    %68 = vector.load %arg4[%c0_39, %c0_40, %c0_41] : memref<1x8x256xf32, #tpu.memory_space<vmem>>, vector<1x8x256xf32>
    %69 = vector.shape_cast %68 : vector<1x8x256xf32> to vector<8x256xf32>
    %70 = vector.shape_cast %67 : vector<8x256xf32> to vector<1x8x256xf32>
    tpu.vector_store %arg4[%c0_39, %c0_40, %c0_41], %70 {strides = array<i32>} : memref<1x8x256xf32, #tpu.memory_space<vmem>>, vector<1x8x256xf32>,
    return
  }
  func.func @transform_0(%arg0: i32) -> (i32, i32, i32) {
    %c0_i32 = arith.constant 0 : i32
    %c0_i32_0 = arith.constant 0 : i32
    %c0_i32_1 = arith.constant 0 : i32
    return %arg0, %c0_i32, %c0_i32_0 : i32, i32, i32
  }
  func.func @transform_1(%arg0: i32) -> (i32, i32, i32) {
    %c0_i32 = arith.constant 0 : i32
    %c0_i32_0 = arith.constant 0 : i32
    %c0_i32_1 = arith.constant 0 : i32
    %c0_i32_2 = arith.constant 0 : i32
    return %c0_i32, %c0_i32_0, %c0_i32_1 : i32, i32, i32
  }
  func.func @transform_2(%arg0: i32) -> (i32, i32) {
    %c0_i32 = arith.constant 0 : i32
    %c0_i32_0 = arith.constant 0 : i32
    %c0_i32_1 = arith.constant 0 : i32
    return %c0_i32, %c0_i32_0 : i32, i32
  }
  func.func @transform_3(%arg0: i32) -> (i32, i32, i32) {
    %c0_i32 = arith.constant 0 : i32
    %c0_i32_0 = arith.constant 0 : i32
    %c0_i32_1 = arith.constant 0 : i32
    return %arg0, %c0_i32, %c0_i32_0 : i32, i32, i32
  }
}

</mosaic_0001>

<bundles_post_ra>
// kernel: conv3x3_pallas.1
= control target key start
LH: loop header
LB: loop body
LE: loop exit
PB: predicated region body
PF: predicated region fallthrough
CT: control target
= control target key end

     0   :  { %s922_s12 = smov 0   ;;  %s1017_s0 = inlined_call_operand.vmem [shape: f32[2,4,256], index: 0, kind: input, shape index: {}]   ;;  %s1018_s1 = inlined_call_operand.vmem [shape: f32[9,8,4], index: 1, kind: input, shape index: {}]   ;;  %s1019_s2 = inlined_call_operand.vmem [shape: f32[2,256], index: 2, kind: input, shape index: {}]   ;;  %s1020_s3 = inlined_call_operand.vmem [shape: f32[2,8,256], index: 3, kind: output, shape index: {}]  }
   0x1 LB: > { %s813_s13 = sadd.s32 4294967295, %s892_s12   ;;  %p817_p0 = scmp.ge.s32.totalorder %s892_s12, 1  ;;  %s892_s12 = sphi %s922_s12, %s13_s12  }
   0x2   : > { %p137_p1 = scmp.lt.s32.totalorder %s892_s12, 3 }
   0x4   : > { %p138_p2 = pnand %p817_p0, %p137_p1 }
   0x5   : > { %p161_p3 = scmp.lt.s32.totalorder (!%p138_p2), %s813_s13, 1  ;;  %s894_s20 = smov (!%p138_p2), 17  }
   0x6   : > { %141 = sbr.rel (%p138_p2) target bundleno = 340 (0x154), region = 32  ;;  %s895_s21 = smov (!%p138_p2), 16  }
   0x7   : > { %s896_s22 = smov (!%p138_p2), 15   ;;  %s897_s23 = smov (!%p138_p2), 1  }
   0x8   : > { %s898_s24 = smov (!%p138_p2), 127   ;;  %s899_s25 = smov (!%p138_p2), 113  }
   0x9   : > { %s900_s26 = smov (!%p138_p2), 112   ;;  %s901_s27 = smov (!%p138_p2), 111  }
   0xb   : > { %v172_v0 = vld [vmem:[%s1019_s2] sm:$0xf]  ;;  %s1022_s13 = smov (!%p161_p3, %s813_s13), 1  ;;  %vm183_vm0 = vcmask 1043456   ;;  %vm207_vm1 = vcmask 138240   ;;  %vm226_vm2 = vcmask 31744  }
   0xc   : > { %v174_v1 = vperm.slane %v172_v0, 1  ;;  %v175_v2 = vperm.slane %v172_v0, 3  ;;  %s868_s16 = sshll.u32 %s1022_s13, 3  ;;  %v188_v8 = vperm.slane %v172_v0, 2  ;;  %v187_v10 = vperm.slane %v172_v0, 0  ;;  %v211_v36 = vld [vmem:[%s1018_s1] sm:$0xff] }
   0xd   : > { %s165_s19 = scalar_lea.vmem %s1017_s0, %s868_s16  ;;  %vm220_vm3 = vcmask 130048   ;;  %vm331_vm4 = vcmask 121856   ;;  %v822_v41 = vld [vmem:[%s1018_s1 + $0x8] sm:$0xff]  ;;  %v831_v46 = vld [vmem:[%s1018_s1 + $0x10] sm:$0xff]  ;;  %vm394_vm5 = vcmask 7168   ;;  %vm574_vm6 = vcmask 924672  }
   0xe   : > { %v178_v3 = vperm.slane %v174_v1, 1  ;;  %v179_v4 = vperm.slane %v175_v2, 1  ;;  %v171_v6 = vld [vmem:[%s165_s19] sm:$0xff]  ;;  %v192_v11 = vperm.slane %v188_v8, 0  ;;  %v191_v12 = vperm.slane %v187_v10, 0  ;;  %v836_v52 = vld [vmem:[%s1018_s1 + $0x18] sm:$0xff] }
   0xf   : > { %v841_v55 = vld [vmem:[%s1018_s1 + $0x20] sm:$0xff]  ;;  %vm511_vm7 = vcmask 1039360   ;;  %v846_v59 = vld [vmem:[%s1018_s1 + $0x28] sm:$0xff]  ;;  %v851_v62 = vld [vmem:[%s1018_s1 + $0x30] sm:$0xff]  ;;  %vm637_vm8 = vcmask 916480   ;;  %vm700_vm9 = vcmask 908288  }
  0x10   : > { %v182_v5 = vrot.slane %v179_v4, 4  ;;  %v195_v13 = vrot.slane %v192_v11, 4  ;;  %v861_v8 = vld [vmem:[%s1018_s1 + $0x40] sm:$0xff] }
  0x12   : > { %v184_v7 = vsel %vm183_vm0, %v178_v3, %v182_v5  ;;  %v196_v16 = vsel %vm183_vm0, %v191_v12, %v195_v13  ;;  %v856_v3 = vld [vmem:[%s1018_s1 + $0x38] sm:$0xff] }
  0x13   : > { %v186_v9 = vmul.f32 %v184_v7, %v171_v6  ;;  %v198_v17 = vmul.f32 %v196_v16, %v171_v6 }
  0x15   : > { %200 = vst [vmem:[#allocation1] ss:$2 sm:$0xff] %v186_v9 }
  0x1c   : > { %v201_v14 = vld.sshfl [vmem:[#allocation1] sm:$0xff pattern:$0x75316420]  ;;  %v202_v15 = vld.sshfl [vmem:[#allocation1 + $0x8] sm:$0xff pattern:$0x75316420] }
  0x1d   : > { %203 = vrot.lane.b32.xlu0 %v201_v14, %s894_s20  ;;  %213 = vst [vmem:[#allocation1] ss:$2 sm:$0xff] %v171_v6 }
  0x24   : > { %v214_v18 = vld.sshfl [vmem:[#allocation1] sm:$0xff pattern:$0x75316420]  ;;  %v215_v19 = vld.sshfl [vmem:[#allocation1 + $0x8] sm:$0xff pattern:$0x75316420] }
  0x25   : > { %216 = vrot.lane.b32.xlu1 %v214_v18, %s895_s21  ;;  %205 = vrot.lane.b32.xlu0 %v202_v15, %s894_s20  ;;  %324 = vst [vmem:[#allocation1] ss:$2 sm:$0xff] %v198_v17 }
  0x2c   : > { %v325_v20 = vld.sshfl [vmem:[#allocation1] sm:$0xff pattern:$0x75316420]  ;;  %v326_v21 = vld.sshfl [vmem:[#allocation1 + $0x8] sm:$0xff pattern:$0x75316420] }
  0x2d   : > { %218 = vrot.lane.b32.xlu1 %v215_v19, %s895_s21  ;;  %387 = vst [vmem:[#allocation1] ss:$2 sm:$0xff] %v186_v9  ;;  %327 = vrot.lane.b32.xlu2 %v325_v20, %s896_s22  ;;  %s869_s21 = sshll.u32 %s1022_s13, 4 }
  0x34   : > { %v389_v22 = vld.sshfl [vmem:[#allocation1 + $0x8] sm:$0xff pattern:$0x75316420]  ;;  %v388_v23 = vld.sshfl [vmem:[#allocation1] sm:$0xff pattern:$0x75316420] }
  0x35   : > { %392 = vrot.lane.b32.xlu1 %v389_v22, %s897_s23  ;;  %390 = vrot.lane.b32.xlu0 %v388_v23, %s897_s23  ;;  %452 = vst [vmem:[#allocation1] ss:$2 sm:$0xff] %v171_v6 }
  0x36   : > { %329 = vrot.lane.b32.xlu2 %v326_v21, %s896_s22 }
  0x3c   : > { %v453_v24 = vld.sshfl [vmem:[#allocation1] sm:$0xff pattern:$0x75316420]  ;;  %v454_v25 = vld.sshfl [vmem:[#allocation1 + $0x8] sm:$0xff pattern:$0x75316420] }
  0x3d   : > { %504 = vst [vmem:[#allocation1] ss:$2 sm:$0xff] %v198_v17 }
  0x44   : > { %v506_v26 = vld.sshfl [vmem:[#allocation1 + $0x8] sm:$0xff pattern:$0x75316420]  ;;  %v505_v27 = vld.sshfl [vmem:[#allocation1] sm:$0xff pattern:$0x75316420] }
  0x45   : > { %509 = vrot.lane.b32.xlu0 %v506_v26, %s898_s24  ;;  %567 = vst [vmem:[#allocation1] ss:$2 sm:$0xff] %v186_v9  ;;  %507 = vrot.lane.b32.xlu2 %v505_v27, %s898_s24  ;;  %s170_s24 = scalar_lea.vmem %s1020_s3, %s869_s21 }
  0x4c   : > { %v568_v28 = vld.sshfl [vmem:[#allocation1] sm:$0xff pattern:$0x75316420]  ;;  %v569_v29 = vld.sshfl [vmem:[#allocation1 + $0x8] sm:$0xff pattern:$0x75316420] }
  0x4d   : > { %570 = vrot.lane.b32.xlu1 %v568_v28, %s899_s25  ;;  %630 = vst [vmem:[#allocation1] ss:$2 sm:$0xff] %v171_v6  ;;  %572 = vrot.lane.b32.xlu2 %v569_v29, %s899_s25 }
  0x54   : > { %v632_v30 = vld.sshfl [vmem:[#allocation1 + $0x8] sm:$0xff pattern:$0x75316420]  ;;  %v631_v31 = vld.sshfl [vmem:[#allocation1] sm:$0xff pattern:$0x75316420] }
  0x55   : > { %635 = vrot.lane.b32.xlu1 %v632_v30, %s900_s26  ;;  %633 = vrot.lane.b32.xlu0 %v631_v31, %s900_s26  ;;  %693 = vst [vmem:[#allocation1] ss:$2 sm:$0xff] %v198_v17 }
  0x5c   : > { %v695_v32 = vld.sshfl [vmem:[#allocation1 + $0x8] sm:$0xff pattern:$0x75316420]  ;;  %v694_v33 = vld.sshfl [vmem:[#allocation1] sm:$0xff pattern:$0x75316420] }
  0x5d   : > { %698 = vrot.lane.b32.xlu0 %v695_v32, %s901_s27  ;;  %696 = vrot.lane.b32.xlu2 %v694_v33, %s901_s27 }
  0x87   : > { %v328_v34 = vpop.permute.xlu2 %327 }
  0x88   : > { %v334_v44 = vsel %vm331_vm4, 0.0, %v328_v34 }
  0x8f   : > { %v204_v35 = vpop.permute.xlu0 %203 }
  0x90   : > { %v210_v37 = vsel %vm207_vm1, 0.0, %v204_v35  ;;  %v330_v38 = vpop.permute.xlu2 %329 }
  0x91   : > { %827 = vmatpush.msk.msra.mxu2 %vm183_vm0, %v210_v37  ;;  %v332_v49 = vsel %vm331_vm4, %v328_v34, %v330_v38 }
  0x92   : > { %828 = vmatmul.msk.f32.vlgmr.msra.gmra.mxu2 %vm226_vm2, %v211_v36 }
  0x97   : > { %v217_v39 = vpop.permute.xlu1 %216  ;;  %v206_v40 = vpop.permute.xlu0 %205 }
  0x98   : > { %v223_v42 = vsel %vm220_vm3, 0.0, %v217_v39  ;;  %v208_v43 = vsel %vm207_vm1, %v204_v35, %v206_v40 }
  0x99   : > { %823 = vmatpush.msk.msra.mxu0 %vm183_vm0, %v223_v42  ;;  %829 = vmatpush.msk.msra.mxu3 %vm183_vm0, %v208_v43 }
  0x9a   : > { %824 = vmatmul.msk.f32.vlgmr.msra.gmra.mxu0 %vm226_vm2, %v822_v41  ;;  %830 = vmatmul.msk.f32.vlgmr.msra.gmra.mxu3 %vm226_vm2, %v211_v36 }
  0x9b   : > { %832 = vmatpush.msk.msrb.mxu0 %vm183_vm0, %v334_v44 }
  0x9d   : > { %842 = vmatpush.msk.msra.mxu0 %vm183_vm0, %v453_v24 }
  0x9f   : > { %v219_v45 = vpop.permute.xlu1 %218  ;;  %v508_v47 = vpop.permute.xlu2 %507 }
  0xa0   : > { %v221_v48 = vsel %vm220_vm3, %v217_v39, %v219_v45 }
  0xa1   : > { %825 = vmatpush.msk.msra.mxu1 %vm183_vm0, %v221_v48 }
  0xa2   : > { %826 = vmatmul.msk.f32.vlgmr.msra.gmra.mxu1 %vm226_vm2, %v822_v41  ;;  %833 = vmatmul.msk.f32.vlgmr.msrb.gmra.mxu0 %vm226_vm2, %v831_v46 }
  0xa3   : > { %834 = vmatpush.msk.msrb.mxu1 %vm183_vm0, %v332_v49 }
  0xa5   : > { %844 = vmatpush.msk.msra.mxu1 %vm183_vm0, %v454_v25 }
  0xa7   : > { %v393_v50 = vpop.permute.xlu1 %392  ;;  %v391_v51 = vpop.permute.xlu0 %390 }
  0xa8   : > { %v397_v53 = vsel %vm394_vm5, 0.0, %v391_v51  ;;  %v395_v54 = vsel %vm394_vm5, %v391_v51, %v393_v50  ;;  %v573_v56 = vpop.permute.xlu2 %572 }
  0xa9   : > { %837 = vmatpush.msk.msrb.mxu2 %vm183_vm0, %v397_v53  ;;  %839 = vmatpush.msk.msrb.mxu3 %vm183_vm0, %v395_v54  ;;  %v577_v57 = vsel %vm574_vm6, %v573_v56, 0.0 }
  0xaa   : > { %835 = vmatmul.msk.f32.vlgmr.msrb.gmra.mxu1 %vm226_vm2, %v831_v46  ;;  %838 = vmatmul.msk.f32.vlgmr.msrb.gmra.mxu2 %vm226_vm2, %v836_v52 }
  0xab   : > { %840 = vmatmul.msk.f32.vlgmr.msrb.gmra.mxu3 %vm226_vm2, %v836_v52  ;;  %843 = vmatmul.msk.f32.vlgmr.msra.gmra.mxu0 %vm226_vm2, %v841_v55 }
  0xac   : > { %854 = vmatpush.msk.msrb.mxu1 %vm183_vm0, %v577_v57 }
  0xb2   : > { %845 = vmatmul.msk.f32.vlgmr.msra.gmra.mxu1 %vm226_vm2, %v841_v55 }
  0xb7   : > { %v510_v58 = vpop.permute.xlu0 %509  ;;  %v697_v6 = vpop.permute.xlu2 %696 }
  0xb8   : > { %v512_v60 = vsel %vm511_vm7, %v508_v47, %v510_v58  ;;  %v514_v61 = vsel %vm511_vm7, %v510_v58, 0.0 }
  0xb9   : > { %847 = vmatpush.msk.msra.mxu2 %vm183_vm0, %v512_v60  ;;  %849 = vmatpush.msk.msra.mxu3 %vm183_vm0, %v514_v61 }
  0xba   : > { %848 = vmatmul.msk.f32.vlgmr.msra.gmra.mxu2 %vm226_vm2, %v846_v59  ;;  %850 = vmatmul.msk.f32.vlgmr.msra.gmra.mxu3 %vm226_vm2, %v846_v59 }
  0xbb   : > { %855 = vmatmul.msk.f32.vlgmr.msrb.gmra.mxu1 %vm226_vm2, %v851_v62 }
  0xbf   : > { %v571_v63 = vpop.permute.xlu1 %570 }
  0xc0   : > { %v575_v0 = vsel %vm574_vm6, %v571_v63, %v573_v56 }
  0xc1   : > { %852 = vmatpush.msk.msrb.mxu0 %vm183_vm0, %v575_v0 }
  0xc2   : > { %853 = vmatmul.msk.f32.vlgmr.msrb.gmra.mxu0 %vm226_vm2, %v851_v62 }
  0xc7   : > { %v636_v1 = vpop.permute.xlu1 %635  ;;  %v634_v2 = vpop.permute.xlu0 %633 }
  0xc8   : > { %v640_v4 = vsel %vm637_vm8, %v636_v1, 0.0  ;;  %v638_v5 = vsel %vm637_vm8, %v634_v2, %v636_v1 }
  0xc9   : > { %857 = vmatpush.msk.msrb.mxu2 %vm183_vm0, %v638_v5  ;;  %859 = vmatpush.msk.msrb.mxu3 %vm183_vm0, %v640_v4 }
  0xca   : > { %858 = vmatmul.msk.f32.vlgmr.msrb.gmra.mxu2 %vm226_vm2, %v856_v3  ;;  %860 = vmatmul.msk.f32.vlgmr.msrb.gmra.mxu3 %vm226_vm2, %v856_v3 }
  0xcf   : > { %v699_v7 = vpop.permute.xlu0 %698 }
  0xd0   : > { %v703_v9 = vsel %vm700_vm9, %v699_v7, 0.0  ;;  %v701_v10 = vsel %vm700_vm9, %v697_v6, %v699_v7 }
  0xd1   : > { %862 = vmatpush.msk.msra.mxu0 %vm183_vm0, %v701_v10  ;;  %864 = vmatpush.msk.msra.mxu1 %vm183_vm0, %v703_v9 }
  0xd2   : > { %863 = vmatmul.msk.f32.vlgmr.msra.gmra.mxu0 %vm226_vm2, %v861_v8  ;;  %865 = vmatmul.msk.f32.vlgmr.msra.gmra.mxu1 %vm226_vm2, %v861_v8 }
 0x115   : > { %v300_v13 = vpop.f32.mrf.mxu2 }
 0x117   : > { %v252_v11 = vpop.f32.mrf.mxu0 }
 0x118   : > { %v301_v17 = vadd.f32 %v300_v13, %v252_v11 }
 0x11d   : > { %v320_v14 = vpop.f32.mrf.mxu3 }
 0x11f   : > { %v272_v12 = vpop.f32.mrf.mxu1  ;;  %v362_v15 = vpop.f32.mrf.mxu0 }
 0x120   : > { %v321_v18 = vadd.f32 %v320_v14, %v272_v12  ;;  %v385_v21 = vadd.f32 %v362_v15, %v301_v17 }
 0x127   : > { %v382_v16 = vpop.f32.mrf.mxu1 }
 0x128   : > { %v386_v22 = vadd.f32 %v382_v16, %v321_v18  ;;  %v479_v23 = vpop.f32.mrf.mxu0 }
 0x12d   : > { %v425_v19 = vpop.f32.mrf.mxu2 }
 0x12e   : > { %v445_v20 = vpop.f32.mrf.mxu3  ;;  %v448_v25 = vadd.f32 %v425_v19, %v385_v21 }
 0x12f   : > { %v499_v24 = vpop.f32.mrf.mxu1  ;;  %v449_v26 = vadd.f32 %v445_v20, %v386_v22 }
 0x130   : > { %v502_v29 = vadd.f32 %v479_v23, %v448_v25 }
 0x131   : > { %v503_v30 = vadd.f32 %v499_v24, %v449_v26 }
 0x138   : > { %v625_v32 = vpop.f32.mrf.mxu1 }
 0x13d   : > { %v542_v27 = vpop.f32.mrf.mxu2  ;;  %v562_v28 = vpop.f32.mrf.mxu3 }
 0x13e   : > { %v565_v33 = vadd.f32 %v542_v27, %v502_v29  ;;  %v566_v34 = vadd.f32 %v562_v28, %v503_v30 }
 0x13f   : > { %v605_v31 = vpop.f32.mrf.mxu0 }
 0x140   : > { %v628_v35 = vadd.f32 %v605_v31, %v565_v33  ;;  %v629_v36 = vadd.f32 %v625_v32, %v566_v34 }
 0x14d   : > { %v668_v37 = vpop.f32.mrf.mxu2  ;;  %v688_v38 = vpop.f32.mrf.mxu3 }
 0x14e   : > { %v691_v39 = vadd.f32 %v668_v37, %v628_v35  ;;  %v692_v40 = vadd.f32 %v688_v38, %v629_v36 }
 0x14f   : > { %v731_v41 = vpop.f32.mrf.mxu0  ;;  %v751_v42 = vpop.f32.mrf.mxu1 }
 0x150   : > { %v754_v43 = vadd.f32 %v731_v41, %v691_v39  ;;  %v755_v44 = vadd.f32 %v751_v42, %v692_v40 }
 0x152   : > { %756 = vst [vmem:[%s170_s24] sm:$0xff] %v754_v43 }
 0x153   : > { %757 = vst [vmem:[%s170_s24 + $0x8] sm:$0xff] %v755_v44 }
 0x154 PF: > { %s13_s12 = sadd.s32 1, %s892_s12  }
 0x155   : > { %p10_p4 = scmp.ge.s32.totalorder %s13_s12, 4  }
 0x157   :  { %12 = sbr.rel (!%p10_p4) target bundleno = 1 (0x1), region = 70 }

</bundles_post_ra>
